<compile_context>
chip_gen: v6e
topology: v6e:2x2x1
jax: 0.10.0
libtpu: 0.0.40
codegen_flags: <defaults>
</compile_context>

<pallas_src>
import math
from functools import partial

import jax
import jax.numpy as jnp
from jax.experimental import pallas as pl
from jax.experimental.pallas import tpu as pltpu


# cos(2*pi*r) = sum_k (-1)^k (2*pi)^(2k) r^(2k) / (2k)!   for r in [-0.5, 0.5]
# Degree 16 (9 coefficients): truncation error <= pi^18/18! ~= 1.4e-7.
_COS2PI_COEFFS = tuple(
    (-1.0) ** k * (2.0 * math.pi) ** (2 * k) / math.factorial(2 * k)
    for k in range(9)
)


def _rfe_kernel(t_ref, w_ref, b_ref, o_ref, *, group, dim, coeffs):
    # t_ref: (R, group)          -- `group` consecutive time values per grouped row
    # w_ref: (1, group*dim)      -- W^T tiled `group` times along lanes
    # b_ref: (1, group*dim)      -- b   tiled `group` times along lanes
    # o_ref: (R, group*dim)      -- cos(2*pi*(t*w + b)), lane-dense when group*dim % 128 == 0
    t = t_ref[...].astype(jnp.float32)
    w = w_ref[...]
    b = b_ref[...]
    rows = t.shape[0]

    if group == 1:
        t_exp = t                                            # (R, 1) broadcasts vs (1, dim)
    else:
        # Build the full-lane operand first, then a single full-lane mul + add.
        t_exp = jnp.concatenate(
            [jnp.broadcast_to(t[:, g:g + 1], (rows, dim)) for g in range(group)],
            axis=-1)                                         # (R, group*dim)

    proj = t_exp * w + b                                     # (R, group*dim)

    # cos(2*pi*proj) in "turns": period-1 range reduction, even polynomial in r^2.
    r = proj - jnp.floor(proj + 0.5)                         # r in [-0.5, 0.5]
    u = r * r
    p = coeffs[-1]
    for c in reversed(coeffs[:-1]):
        p = p * u + c
    o_ref[...] = p.astype(o_ref.dtype)


def random_fourier_embed(times, weight, bias, *, block_rows=2048,
                         vmem_budget_bytes=8 * 1024 * 1024,
                         out_dtype=jnp.float32,
                         min_grid_steps=4):
    """times: arbitrary-shape float array; weight: (dim, 1); bias: (dim,).

    Returns cos(2*pi*(times[..., None] @ weight.T + bias)), shape times.shape + (dim,).
    """
    dim = int(weight.shape[0])
    orig_shape = times.shape
    t_flat = times.reshape(-1).astype(jnp.float32)
    n = int(t_flat.shape[0])

    # Group `group` time values per output row so the output lane width is a
    # multiple of 128 when possible (lane-dense writeback, unmasked vst).
    if dim < 128 and 128 % dim == 0:
        group = 128 // dim
    else:
        # TODO(synk): dims that neither divide 128 nor are a multiple of 128 keep masked stores.
        group = 1
    lane_out = group * dim

    if group == 1:
        # No padding / no epilogue slice: Pallas clips the ragged last row-block.
        rows_total = n
        n_pad = n
        t2d = t_flat.reshape(rows_total, 1)
    else:
        n_pad = int(pl.cdiv(n, group)) * group
        if n_pad != n:
            t_flat = jnp.pad(t_flat, (0, n_pad - n))
        rows_total = n_pad // group
        t2d = t_flat.reshape(rows_total, group)

    # Parameter rows tiled to the full lane width (O(dim) work, not data-sized).
    w_full = jnp.tile(weight.reshape(1, dim).astype(jnp.float32), (1, group))
    b_full = jnp.tile(bias.reshape(1, dim).astype(jnp.float32), (1, group))

    # --- Tile sizing -------------------------------------------------------
    out_bytes = jnp.dtype(out_dtype).itemsize
    granule = 16 if out_dtype == jnp.bfloat16 else 8   # sublane packing granule

    # Double-buffered input (lane-padded to 128) + double-buffered output
    # + ~3 f32 full-width kernel temporaries (t_exp / proj / poly accumulator).
    bytes_per_row = 2 * 4 * 128 + 2 * out_bytes * lane_out + 3 * 4 * lane_out
    budget_rows = max(granule, (vmem_budget_bytes // bytes_per_row) // granule * granule)

    # Keep >= min_grid_steps grid steps so the "parallel" axis actually gives
    # both v7x TensorCores work (neutral on single-TC v5e/v6e).
    split_rows = int(pl.cdiv(int(pl.cdiv(rows_total, min_grid_steps)), granule)) * granule

    req_rows = max(granule, (int(block_rows) // granule) * granule)
    block_rows = max(granule, min(req_rows, budget_rows, split_rows))

    grid = (int(pl.cdiv(rows_total, block_rows)),)

    out2 = pl.pallas_call(
        partial(_rfe_kernel, group=group, dim=dim, coeffs=_COS2PI_COEFFS),
        out_shape=jax.ShapeDtypeStruct((rows_total, lane_out), out_dtype),
        grid_spec=pltpu.PrefetchScalarGridSpec(
            num_scalar_prefetch=0,
            grid=grid,
            in_specs=[
                pl.BlockSpec((block_rows, group), lambda i: (i, 0)),   # times tile
                pl.BlockSpec((1, lane_out), lambda i: (0, 0)),         # tiled W (resident)
                pl.BlockSpec((1, lane_out), lambda i: (0, 0)),         # tiled b (resident)
            ],
            out_specs=pl.BlockSpec((block_rows, lane_out), lambda i: (i, 0)),
        ),
        compiler_params=pltpu.CompilerParams(
            # Row axis is independent -> v7x can shard it across its 2 TCs.
            dimension_semantics=("parallel",),
        ),
    )(t2d, w_full, b_full)

    if group == 1:
        out = out2                                   # already (n, dim)
    else:
        # Row-major collapse (rows_total, group*dim) -> (n_pad, dim) is free.
        out = out2.reshape(n_pad, dim)
        if n_pad != n:
            # TODO(synk): this prefix slice may materialize a copy if it does not
            # fuse into the consumer; only hit when n % group != 0.
            out = out[:n]
    return out.reshape(*orig_shape, dim)


def random_fourier_embed_ref(times, weight, bias):
    proj = times[..., None] * weight.reshape(-1) + bias.reshape(-1)
    return jnp.cos(2.0 * math.pi * proj)


if __name__ == "__main__":
    key = jax.random.PRNGKey(0)
    k_t, k_w, k_b, k_t2, k_t3, k_w2, k_b2 = jax.random.split(key, 7)

    # Main check: batch=2, seq=8, dim=32. nn.Linear(1, dim) default init (fan_in=1)
    # is U(-1, 1) for both weight and bias.
    batch, seq, dim = 2, 8, 32
    weight = jax.random.uniform(k_w, (dim, 1), jnp.float32, minval=-1.0, maxval=1.0)
    bias = jax.random.uniform(k_b, (dim,), jnp.float32, minval=-1.0, maxval=1.0)
    times = jax.random.uniform(k_t, (batch, seq), jnp.float32)

    out = jax.block_until_ready(random_fourier_embed(times, weight, bias))
    ref = random_fourier_embed_ref(times, weight, bias)
    assert out.shape == (batch, seq, dim), out.shape
    assert jnp.allclose(out, ref, atol=5e-5, rtol=0.0), float(jnp.max(jnp.abs(out - ref)))

    # Multi-block grid with a ragged last block and n % group != 0.
    times_r = jax.random.uniform(k_t2, (75,), jnp.float32)
    out_r = jax.block_until_ready(
        random_fourier_embed(times_r, weight, bias, block_rows=16))
    ref_r = random_fourier_embed_ref(times_r, weight, bias)
    assert out_r.shape == (75, dim), out_r.shape
    assert jnp.allclose(out_r, ref_r, atol=5e-5, rtol=0.0), \
        float(jnp.max(jnp.abs(out_r - ref_r)))

    # dim already lane-dense (multiple of 128) -> group == 1 path, ragged N, no pad.
    dim2 = 128
    weight2 = jax.random.uniform(k_w2, (dim2, 1), jnp.float32, minval=-1.0, maxval=1.0)
    bias2 = jax.random.uniform(k_b2, (dim2,), jnp.float32, minval=-1.0, maxval=1.0)
    times2 = jax.random.uniform(k_t3, (5,), jnp.float32)
    out2 = jax.block_until_ready(random_fourier_embed(times2, weight2, bias2))
    ref2 = random_fourier_embed_ref(times2, weight2, bias2)
    assert out2.shape == (5, dim2), out2.shape
    assert jnp.allclose(out2, ref2, atol=5e-5, rtol=0.0), \
        float(jnp.max(jnp.abs(out2 - ref2)))

    # bf16 output path (halves store traffic; cos output is in [-1, 1]).
    out_bf16 = jax.block_until_ready(
        random_fourier_embed(times, weight, bias, out_dtype=jnp.bfloat16))
    assert out_bf16.dtype == jnp.bfloat16
    assert jnp.allclose(out_bf16.astype(jnp.float32), ref, atol=8e-3, rtol=0.0), \
        float(jnp.max(jnp.abs(out_bf16.astype(jnp.float32) - ref)))

    print("KERNEL_OK")
</pallas_src>

<mosaic_0001>
module attributes {stable_mosaic.version = 11 : i64} {
  func.func @_rfe_kernel(%arg0: i32, %arg1: memref<8x4xf32, #tpu.memory_space<vmem>>, %arg2: memref<1x128xf32, #tpu.memory_space<vmem>>, %arg3: memref<1x128xf32, #tpu.memory_space<vmem>>, %arg4: memref<8x128xf32, #tpu.memory_space<vmem>>) attributes {dimension_semantics = [#tpu.dimension_semantics<parallel>], iteration_bounds = array<i64: 1>, scalar_prefetch = 0 : i64, scratch_operands = 0 : i64, tpu.core_type = #tpu.core_type<tc>, window_params = [{transform_indices = @transform_0, window_bounds = array<i64: 8, 4>}, {pipeline_mode = #tpu.pipeline_mode<synchronous>, transform_indices = @transform_1, window_bounds = array<i64: 1, 128>}, {pipeline_mode = #tpu.pipeline_mode<synchronous>, transform_indices = @transform_2, window_bounds = array<i64: 1, 128>}, {transform_indices = @transform_3, window_bounds = array<i64: 8, 128>}]} {
    %c0 = arith.constant 0 : index
    %c0_0 = arith.constant 0 : index
    %0 = vector.load %arg1[%c0, %c0_0] : memref<8x4xf32, #tpu.memory_space<vmem>>, vector<8x4xf32>
    %c0_1 = arith.constant 0 : index
    %c0_2 = arith.constant 0 : index
    %1 = vector.load %arg2[%c0_1, %c0_2] : memref<1x128xf32, #tpu.memory_space<vmem>>, vector<1x128xf32>
    %c0_3 = arith.constant 0 : index
    %c0_4 = arith.constant 0 : index
    %2 = vector.load %arg3[%c0_3, %c0_4] : memref<1x128xf32, #tpu.memory_space<vmem>>, vector<1x128xf32>
    %3 = vector.extract_strided_slice %0 {offsets = [0, 0], sizes = [8, 1], strides = [1, 1]} : vector<8x4xf32> to vector<8x1xf32>
    %4 = vector.shape_cast %3 : vector<8x1xf32> to vector<8x1xf32>
    %5 = vector.broadcast %4 : vector<8x1xf32> to vector<8x32xf32>
    %6 = vector.extract_strided_slice %0 {offsets = [0, 1], sizes = [8, 1], strides = [1, 1]} : vector<8x4xf32> to vector<8x1xf32>
    %7 = vector.shape_cast %6 : vector<8x1xf32> to vector<8x1xf32>
    %8 = vector.broadcast %7 : vector<8x1xf32> to vector<8x32xf32>
    %9 = vector.extract_strided_slice %0 {offsets = [0, 2], sizes = [8, 1], strides = [1, 1]} : vector<8x4xf32> to vector<8x1xf32>
    %10 = vector.shape_cast %9 : vector<8x1xf32> to vector<8x1xf32>
    %11 = vector.broadcast %10 : vector<8x1xf32> to vector<8x32xf32>
    %12 = vector.extract_strided_slice %0 {offsets = [0, 3], sizes = [8, 1], strides = [1, 1]} : vector<8x4xf32> to vector<8x1xf32>
    %13 = vector.shape_cast %12 : vector<8x1xf32> to vector<8x1xf32>
    %14 = vector.broadcast %13 : vector<8x1xf32> to vector<8x32xf32>
    %15 = tpu.concatenate %5, %8, %11, %14 in 1 : vector<8x32xf32>, vector<8x32xf32>, vector<8x32xf32>, vector<8x32xf32> -> vector<8x128xf32>
    %16 = vector.broadcast %1 : vector<1x128xf32> to vector<8x128xf32>
    %17 = arith.mulf %15, %16 : vector<8x128xf32>
    %18 = vector.broadcast %2 : vector<1x128xf32> to vector<8x128xf32>
    %19 = arith.addf %17, %18 : vector<8x128xf32>
    %cst = arith.constant 5.000000e-01 : f32
    %20 = vector.broadcast %cst : f32 to vector<8x128xf32>
    %21 = arith.addf %19, %20 : vector<8x128xf32>
    %22 = math.floor %21 : vector<8x128xf32>
    %23 = arith.subf %19, %22 : vector<8x128xf32>
    %24 = arith.mulf %23, %23 : vector<8x128xf32>
    %cst_5 = arith.constant 0.282005966 : f32
    %25 = vector.broadcast %cst_5 : f32 to vector<8x128xf32>
    %26 = arith.mulf %25, %24 : vector<8x128xf32>
    %cst_6 = arith.constant -1.71439075 : f32
    %27 = vector.broadcast %cst_6 : f32 to vector<8x128xf32>
    %28 = arith.addf %26, %27 : vector<8x128xf32>
    %29 = arith.mulf %28, %24 : vector<8x128xf32>
    %cst_7 = arith.constant 7.90353632 : f32
    %30 = vector.broadcast %cst_7 : f32 to vector<8x128xf32>
    %31 = arith.addf %29, %30 : vector<8x128xf32>
    %32 = arith.mulf %31, %24 : vector<8x128xf32>
    %cst_8 = arith.constant -26.4262562 : f32
    %33 = vector.broadcast %cst_8 : f32 to vector<8x128xf32>
    %34 = arith.addf %32, %33 : vector<8x128xf32>
    %35 = arith.mulf %34, %24 : vector<8x128xf32>
    %cst_9 = arith.constant 60.2446404 : f32
    %36 = vector.broadcast %cst_9 : f32 to vector<8x128xf32>
    %37 = arith.addf %35, %36 : vector<8x128xf32>
    %38 = arith.mulf %37, %24 : vector<8x128xf32>
    %cst_10 = arith.constant -85.4568176 : f32
    %39 = vector.broadcast %cst_10 : f32 to vector<8x128xf32>
    %40 = arith.addf %38, %39 : vector<8x128xf32>
    %41 = arith.mulf %40, %24 : vector<8x128xf32>
    %cst_11 = arith.constant 64.9393921 : f32
    %42 = vector.broadcast %cst_11 : f32 to vector<8x128xf32>
    %43 = arith.addf %41, %42 : vector<8x128xf32>
    %44 = arith.mulf %43, %24 : vector<8x128xf32>
    %cst_12 = arith.constant -19.7392082 : f32
    %45 = vector.broadcast %cst_12 : f32 to vector<8x128xf32>
    %46 = arith.addf %44, %45 : vector<8x128xf32>
    %47 = arith.mulf %46, %24 : vector<8x128xf32>
    %cst_13 = arith.constant 1.000000e+00 : f32
    %48 = vector.broadcast %cst_13 : f32 to vector<8x128xf32>
    %49 = arith.addf %47, %48 : vector<8x128xf32>
    %c0_14 = arith.constant 0 : index
    %c0_15 = arith.constant 0 : index
    %50 = vector.load %arg4[%c0_14, %c0_15] : memref<8x128xf32, #tpu.memory_space<vmem>>, vector<8x128xf32>
    tpu.vector_store %arg4[%c0_14, %c0_15], %49 {strides = array<i32>} : memref<8x128xf32, #tpu.memory_space<vmem>>, vector<8x128xf32>,
    return
  }
  func.func @transform_0(%arg0: i32) -> (i32, i32) {
    %c0_i32 = arith.constant 0 : i32
    %c0_i32_0 = arith.constant 0 : i32
    return %arg0, %c0_i32 : i32, i32
  }
  func.func @transform_1(%arg0: i32) -> (i32, i32) {
    %c0_i32 = arith.constant 0 : i32
    %c0_i32_0 = arith.constant 0 : i32
    %c0_i32_1 = arith.constant 0 : i32
    return %c0_i32, %c0_i32_0 : i32, i32
  }
  func.func @transform_2(%arg0: i32) -> (i32, i32) {
    %c0_i32 = arith.constant 0 : i32
    %c0_i32_0 = arith.constant 0 : i32
    %c0_i32_1 = arith.constant 0 : i32
    return %c0_i32, %c0_i32_0 : i32, i32
  }
  func.func @transform_3(%arg0: i32) -> (i32, i32) {
    %c0_i32 = arith.constant 0 : i32
    %c0_i32_0 = arith.constant 0 : i32
    return %arg0, %c0_i32 : i32, i32
  }
}

</mosaic_0001>

<bundles_post_ra>
// kernel: tpu_custom_call.1
= control target key start
LH: loop header
LB: loop body
LE: loop exit
PB: predicated region body
PF: predicated region fallthrough
CT: control target
= control target key end

     0   :  { %8 = vsyncpa [#allocation3], 0  ;;  %s212_s0 = inlined_call_operand.hbm [shape: f32[4,4], index: 0, kind: input, shape index: {}]   ;;  %s213_s1 = inlined_call_operand.vmem [shape: f32[1,128], index: 1, kind: input, shape index: {}]   ;;  %s214_s2 = inlined_call_operand.vmem [shape: f32[1,128], index: 2, kind: input, shape index: {}]   ;;  %s215_s3 = inlined_call_operand.hbm [shape: f32[4,128], index: 3, kind: output, shape index: {}]  }
   0x1   :  { %9 = vsyncpa [#allocation4], 0 }
   0x2   :  { %14 = vsyncadd [#allocation3], 64  ;;  %s166_s12 = smov [#allocation2]  }
   0x3   :  { %s15_s13 = sshll.u32 %s166_s12, 4  ;;  %s16_s13 = int_to_ptr.vmem [resolvable:$true] %s15_s13 }
   0x4   :  { %s130_s14 = scalar_lea.vmem %s16_s13, 64  ;;  %s134_s15 = scalar_lea.vmem %s16_s13, 128 }
   0x5   :  { %p131_p0 = scmp.ne.s32.totalorder %s16_s13, %s130_s14  ;;  %p135_p1 = scmp.lt.s32.totalorder %s16_s13, %s16_s13 }
   0x6   :  { %p136_p2 = scmp.lt.s32.totalorder %s134_s15, %s130_s14 }
   0x8   :  { %p137_p3 = por %p136_p2, %p135_p1 }
   0xa   :  { %p138_p4 = pnand %p137_p3, %p131_p0 }
   0xc   :  { %141 = shalt.err (!%p138_p4)
}
   0xd   :  { %s167_s16 = smov 64   ;;  %s168_s17 = smov 4  }
   0xe   :  { %21 = dma.hbm_to_vmem [thread:$0]  %s212_s0, 64, %s16_s13, [#allocation3], %s167_s16, %s167_s16, %s168_s17  }
   0xf   :  { %162 = dma.done.wait [#allocation3], 128  }
  0x10   :  { %163 = vsyncadd [#allocation3], 4294967168  ;;  %v169_v0 = vmov 0   ;;  %v170_v1 = vmov 2   ;;  %v29_v2 = vld [vmem:[#allocation2] sm:$0xff]  ;;  %v171_v3 = vmov 1  }
  0x11   :  { %117 = vset.pattern.permute.xlu0 %v169_v0  ;;  %119 = vset.pattern.permute.xlu1 %v170_v1  ;;  %v172_v4 = vmov 3   ;;  %vm49_vm0 = vcmask 261120   ;;  %vm51_vm1 = vcmask 523264   ;;  %vm53_vm2 = vcmask 785408   ;;  %v107_v10 = vld [vmem:[%s213_s1] ss:$0 sm:$0xff] }
  0x12   :  { %34 = vperm.xlu0 %117, %v29_v2   ;;  %42 = vperm.xlu1 %119, %v29_v2   ;;  %v108_v12 = vld [vmem:[%s214_s2] ss:$0 sm:$0xff] }
  0x16   :  { %118 = vset.pattern.permute.xlu0 %v171_v3  ;;  %120 = vset.pattern.permute.xlu1 %v172_v4 }
  0x17   :  { %38 = vperm.xlu0 %118, %v29_v2   ;;  %46 = vperm.xlu1 %120, %v29_v2  }
  0x1b   :  { %121 = vset.pattern.permute.xlu0 %v172_v4 }
  0x8d   :  { %v35_v5 = vpop.permute.xlu0 %34  ;;  %v43_v6 = vpop.permute.xlu1 %42 }
  0x92   :  { %v39_v7 = vpop.permute.xlu0 %38  ;;  %v47_v8 = vpop.permute.xlu1 %46 }
  0x93   :  { %v50_v9 = vsel %vm49_vm0, %v35_v5, %v39_v7 }
  0x94   :  { %v52_v11 = vsel %vm51_vm1, %v50_v9, %v43_v6 }
  0x95   :  { %v54_v13 = vsel %vm53_vm2, %v52_v11, %v47_v8 }
  0x96   :  { %v61_v14 = vmul.f32 %v107_v10, %v54_v13 }
  0x98   :  { %v68_v15 = vadd.f32 %v108_v12, %v61_v14 }
  0x9a   :  { %v69_v16 = vadd.f32 0.5, %v68_v15 }
  0x9c   :  { %v70_v17 = vfloor.f32 %v69_v16 }
  0x9e   :  { %v71_v18 = vsub.f32 %v68_v15, %v70_v17 }
  0xa0   :  { %v72_v19 = vmul.f32 %v71_v18, %v71_v18 }
  0xa2   :  { %v73_v20 = vmul.f32 0.28200597, %v72_v19 }
  0xa4   :  { %v74_v21 = vadd.f32 -1.7143908, %v73_v20 }
  0xa6   :  { %v75_v22 = vmul.f32 %v74_v21, %v72_v19 }
  0xa8   :  { %v76_v23 = vadd.f32 7.9035363, %v75_v22 }
  0xaa   :  { %v77_v24 = vmul.f32 %v76_v23, %v72_v19 }
  0xac   :  { %v78_v25 = vadd.f32 -26.426256, %v77_v24 }
  0xae   :  { %v79_v26 = vmul.f32 %v78_v25, %v72_v19 }
  0xb0   :  { %v80_v27 = vadd.f32 60.24464, %v79_v26 }
  0xb2   :  { %v81_v28 = vmul.f32 %v80_v27, %v72_v19 }
  0xb4   :  { %v82_v29 = vadd.f32 -85.45682, %v81_v28 }
  0xb6   :  { %v83_v30 = vmul.f32 %v82_v29, %v72_v19 }
  0xb8   :  { %v84_v31 = vadd.f32 64.93939, %v83_v30 }
  0xba   :  { %v85_v32 = vmul.f32 %v84_v31, %v72_v19 }
  0xbc   :  { %v86_v33 = vadd.f32 -19.739208, %v85_v32 }
  0xbe   :  { %v87_v34 = vmul.f32 %v86_v33, %v72_v19 }
  0xc0   :  { %v88_v35 = vadd.f32 1.0, %v87_v34 }
  0xc2   :  { %89 = vst [vmem:[#allocation5] sm:$0xff] %v88_v35 }
  0xc3   :  { %94 = vsyncadd [#allocation4], 64  ;;  %s173_s1 = smov [#allocation5]  }
  0xc4   :  { %s95_s2 = sshll.u32 %s173_s1, 4  ;;  %s96_s2 = int_to_ptr.vmem [resolvable:$true] %s95_s2 }
  0xc5   :  { %s142_s23 = scalar_lea.vmem %s96_s2, 64  ;;  %s146_s24 = scalar_lea.vmem %s96_s2, 128 }
  0xc6   :  { %p143_p5 = scmp.ne.s32.totalorder %s96_s2, %s142_s23  ;;  %p147_p6 = scmp.lt.s32.totalorder %s96_s2, %s96_s2 }
  0xc7   :  { %p148_p7 = scmp.lt.s32.totalorder %s146_s24, %s142_s23 }
  0xc9   :  { %p149_p8 = por %p148_p7, %p147_p6 }
  0xcb   :  { %p150_p9 = pnand %p149_p8, %p143_p5 }
  0xcd   :  { %153 = shalt.err (!%p150_p9)
}
  0xce   :  { %101 = dma.vmem_to_hbm [thread:$0]  %s96_s2, 64, %s215_s3, [#allocation4], %s167_s16, %s167_s16, %s168_s17  }
  0xcf   :  { %164 = dma.done.wait [#allocation4], 128  }
  0xd0   :  { %165 = vsyncadd [#allocation4], 4294967168 }
  0xd1   :  { %105 = vsyncpa [#allocation3], 1 }
  0xd2   :  { %106 = vsyncpa [#allocation4], 1 }

</bundles_post_ra>
